<compile_context>
chip_gen: v6e
topology: v6e:2x2x1
jax: 0.10.0
libtpu: 0.0.40
codegen_flags: <defaults>
</compile_context>

<pallas_src>
import functools

import jax
import jax.numpy as jnp
from jax.experimental import pallas as pl
from jax.experimental.pallas import tpu as pltpu

CONFIG = {
    "num_users": 597,
    "num_items": 23733,
    "latent_dim_mf": 8,
    "latent_dim_mlp": 8,
    "layers": [16, 32, 16, 8],
}
HIDDEN_SIZE = 32
BN_EPS = 1e-5

_VMEM_LIMIT = 32 * 1024 * 1024  # explicit scoped-VMEM budget, safe on v5e/v6e/v7x


def _round_up(x, m):
    return ((x + m - 1) // m) * m


# --------------------------------------------------------------------------- #
# Kernel 1: NeuMF head + fc1, plus masked batch-statistic accumulation.
# All activations are [feature, TILE_B] (batch on the lane axis).
# --------------------------------------------------------------------------- #
def _ncf_fc1_kernel(b_true, b_pad, tile_b,
                    u_mlp, i_mlp, u_mf, i_mf,
                    w0u, w0i, b0, w1, b1, w2, b2,
                    f1h, f1m, f1b,
                    z_ref, zsum_ref, zsq_ref):
    i = pl.program_id(0)

    # NCF MLP tower: 16 -> 32 -> 16 -> 8 (ReLU each); concat replaced by
    # split contractions (w0[:8] for user half, w0[8:] for item half).
    h = jnp.dot(w0u[...], u_mlp[...], preferred_element_type=jnp.float32)
    h = h + jnp.dot(w0i[...], i_mlp[...], preferred_element_type=jnp.float32)
    h = jnp.maximum(h + b0[...], 0.0)                                   # [32, T]
    h = jnp.maximum(
        jnp.dot(w1[...], h, preferred_element_type=jnp.float32) + b1[...], 0.0)  # [16, T]
    h = jnp.maximum(
        jnp.dot(w2[...], h, preferred_element_type=jnp.float32) + b2[...], 0.0)  # [8, T]

    # GMF branch: element-wise product of MF embeddings.
    mf = u_mf[...] * i_mf[...]                                          # [8, T]

    # fc1 on concat(h, mf) -> split contraction again.
    z = jnp.dot(f1h[...], h, preferred_element_type=jnp.float32)
    z = z + jnp.dot(f1m[...], mf, preferred_element_type=jnp.float32)
    z = z + f1b[...]                                                    # [H, T]
    z_ref[...] = z

    # Full-batch BN statistics: accumulate masked sum / sum-of-squares.
    @pl.when(i == 0)
    def _():
        zsum_ref[...] = jnp.zeros_like(zsum_ref)
        zsq_ref[...] = jnp.zeros_like(zsq_ref)

    if b_pad == b_true:
        zm = z
    else:
        col = jax.lax.broadcasted_iota(jnp.int32, (1, tile_b), 1) + i * tile_b
        zm = jnp.where(col < b_true, z, 0.0)
    zsum_ref[...] += jnp.sum(zm, axis=1, keepdims=True)
    zsq_ref[...] += jnp.sum(zm * zm, axis=1, keepdims=True)


# --------------------------------------------------------------------------- #
# Kernel 2: fused BN scale/shift -> ReLU -> fc3 -> sigmoid.  Output is a
# lane-dense (1, TILE_B) row per grid step.
# --------------------------------------------------------------------------- #
def _bn_fc3_kernel(z_ref, scale_ref, shift_ref, w3_ref, b3_ref, out_ref):
    a = jnp.maximum(z_ref[...] * scale_ref[...] + shift_ref[...], 0.0)  # [H, T]
    o = jnp.dot(w3_ref[...], a, preferred_element_type=jnp.float32) + b3_ref[...]  # [1, T]
    out_ref[...] = 1.0 / (1.0 + jnp.exp(-o))


# --------------------------------------------------------------------------- #
# Wrapper
# --------------------------------------------------------------------------- #
def _mlp_forward(params, users, items):
    """users, items: int32 [B].  Returns sigmoid scores [B, 1]."""
    B = users.shape[0]
    H = params["fc1_w"].shape[1]

    TILE_B = min(2048, _round_up(max(B, 1), 128))
    B_pad = _round_up(B, TILE_B)
    n_tiles = B_pad // TILE_B

    # ---- glue: embedding gathers + transpose to [feat, B_pad] ---------------
    users_p = jnp.pad(users, (0, B_pad - B))
    items_p = jnp.pad(items, (0, B_pad - B))
    u_mlp = jnp.take(params["emb_user_mlp"], users_p, axis=0).T   # [8, B_pad]
    i_mlp = jnp.take(params["emb_item_mlp"], items_p, axis=0).T   # [8, B_pad]
    u_mf = jnp.take(params["emb_user_mf"], users_p, axis=0).T     # [8, B_pad]
    i_mf = jnp.take(params["emb_item_mf"], items_p, axis=0).T     # [8, B_pad]

    # ---- glue: pre-split / pre-transpose tiny weights -----------------------
    w0 = params["ncf_w0"]
    w0u_t, w0i_t = w0[:8].T, w0[8:].T                 # [32, 8] each
    b0_t = params["ncf_b0"].T                          # [32, 1]
    w1_t, b1_t = params["ncf_w1"].T, params["ncf_b1"].T   # [16, 32], [16, 1]
    w2_t, b2_t = params["ncf_w2"].T, params["ncf_b2"].T   # [8, 16],  [8, 1]
    f1 = params["fc1_w"]
    f1h_t, f1m_t = f1[:8].T, f1[8:].T                 # [H, 8] each
    f1b_t = params["fc1_b"].T                          # [H, 1]
    f3_t = params["fc3_w"].T                           # [1, H]
    f3b = params["fc3_b"]                              # [1, 1]
    bn_g = params["bn_g"].T                            # [H, 1]
    bn_b = params["bn_b"].T                            # [H, 1]

    weights = [w0u_t, w0i_t, b0_t, w1_t, b1_t, w2_t, b2_t, f1h_t, f1m_t, f1b_t]

    emb_spec = pl.BlockSpec((8, TILE_B), lambda i: (0, i))

    def full_spec(a):
        return pl.BlockSpec(a.shape, lambda i: (0, 0))

    # ---- pass 1: NCF + fc1 + batch-stat accumulation ------------------------
    k1_flops = 2 * B_pad * (8 * 32 + 8 * 32 + 32 * 16 + 16 * 8 + 8 * H + 8 * H)
    k1_bytes = B_pad * (4 * 8 * 4 + H * 4) + 8 * 1024
    z, zsum, zsq = pl.pallas_call(
        functools.partial(_ncf_fc1_kernel, B, B_pad, TILE_B),
        grid=(n_tiles,),
        in_specs=[emb_spec] * 4 + [full_spec(w) for w in weights],
        out_specs=(
            pl.BlockSpec((H, TILE_B), lambda i: (0, i)),
            pl.BlockSpec((H, 1), lambda i: (0, 0)),   # resident accumulator
            pl.BlockSpec((H, 1), lambda i: (0, 0)),   # resident accumulator
        ),
        out_shape=(
            jax.ShapeDtypeStruct((H, B_pad), jnp.float32),
            jax.ShapeDtypeStruct((H, 1), jnp.float32),
            jax.ShapeDtypeStruct((H, 1), jnp.float32),
        ),
        compiler_params=pltpu.CompilerParams(
            dimension_semantics=("arbitrary",),       # accumulator -> sequential
            vmem_limit_bytes=_VMEM_LIMIT),
        cost_estimate=pl.CostEstimate(
            flops=k1_flops, transcendentals=0, bytes_accessed=k1_bytes),
    )(u_mlp, i_mlp, u_mf, i_mf, *weights)

    # ---- tiny JAX glue: full-batch BN stats -> fused scale / shift ----------
    mu = zsum / B
    var = jnp.maximum(zsq / B - mu * mu, 0.0)          # biased (training-mode) var
    scale = bn_g * jax.lax.rsqrt(var + BN_EPS)          # [H, 1]
    shift = bn_b - mu * scale                           # [H, 1]

    # ---- pass 2: BN + ReLU + fc3 + sigmoid (lane-dense output) --------------
    k2_flops = B_pad * (6 * H + 4)
    k2_bytes = B_pad * (H * 4 + 4)
    out_row = pl.pallas_call(
        _bn_fc3_kernel,
        grid=(n_tiles,),
        in_specs=[
            pl.BlockSpec((H, TILE_B), lambda i: (0, i)),
            full_spec(scale), full_spec(shift), full_spec(f3_t), full_spec(f3b),
        ],
        out_specs=pl.BlockSpec((1, TILE_B), lambda i: (0, i)),
        out_shape=jax.ShapeDtypeStruct((1, B_pad), jnp.float32),
        compiler_params=pltpu.CompilerParams(
            dimension_semantics=("parallel",),         # shards across v7x 2 TCs
            vmem_limit_bytes=_VMEM_LIMIT),
        cost_estimate=pl.CostEstimate(
            flops=k2_flops, transcendentals=B_pad, bytes_accessed=k2_bytes),
    )(z, scale, shift, f3_t, f3b)

    return out_row[0, :B].reshape(B, 1)


mlp_forward = jax.jit(_mlp_forward)


# --------------------------------------------------------------------------- #
# Parameter construction (linear weights stored as [in, out]).
# --------------------------------------------------------------------------- #
def init_params(key, config, hidden_size):
    ks = jax.random.split(key, 16)
    dm = config["latent_dim_mlp"]
    df = config["latent_dim_mf"]
    l0, l1, l2, l3 = config["layers"]          # [16, 32, 16, 8]

    def lin(kw, kb, fan_in, fan_out):
        bound = 1.0 / jnp.sqrt(fan_in)
        w = jax.random.uniform(kw, (fan_in, fan_out), jnp.float32, -bound, bound)
        b = jax.random.uniform(kb, (1, fan_out), jnp.float32, -bound, bound)
        return w, b

    params = {}
    params["emb_user_mlp"] = 0.1 * jax.random.normal(ks[0], (config["num_users"], dm), jnp.float32)
    params["emb_item_mlp"] = 0.1 * jax.random.normal(ks[1], (config["num_items"], dm), jnp.float32)
    params["emb_user_mf"] = 0.1 * jax.random.normal(ks[2], (config["num_users"], df), jnp.float32)
    params["emb_item_mf"] = 0.1 * jax.random.normal(ks[3], (config["num_items"], df), jnp.float32)

    params["ncf_w0"], params["ncf_b0"] = lin(ks[4], ks[5], l0, l1)
    params["ncf_w1"], params["ncf_b1"] = lin(ks[6], ks[7], l1, l2)
    params["ncf_w2"], params["ncf_b2"] = lin(ks[8], ks[9], l2, l3)

    input_size = dm + df                        # 16
    params["fc1_w"], params["fc1_b"] = lin(ks[10], ks[11], input_size, hidden_size)
    params["fc3_w"], params["fc3_b"] = lin(ks[12], ks[13], hidden_size, 1)

    params["bn_g"] = jnp.ones((1, hidden_size), jnp.float32)
    params["bn_b"] = jnp.zeros((1, hidden_size), jnp.float32)
    return params


if __name__ == "__main__":
    key = jax.random.PRNGKey(0)
    k_params, k_u, k_i = jax.random.split(key, 3)

    params = init_params(k_params, CONFIG, HIDDEN_SIZE)

    B = 2
    users = jax.random.randint(k_u, (B,), 0, CONFIG["num_users"], dtype=jnp.int32)
    items = jax.random.randint(k_i, (B,), 0, CONFIG["num_items"], dtype=jnp.int32)

    out = mlp_forward(params, users, items)
    out = jax.block_until_ready(out)
    assert out.shape == (B, 1)
    assert bool(jnp.all(jnp.isfinite(out)))
    assert bool(jnp.all((out >= 0.0) & (out <= 1.0)))
    print("KERNEL_OK")
</pallas_src>

<mosaic_0001>
module attributes {stable_mosaic.version = 11 : i64} {
  func.func @_bn_fc3_kernel(%arg0: i32, %arg1: memref<32x128xf32, #tpu.memory_space<vmem>>, %arg2: memref<32x1xf32, #tpu.memory_space<vmem>>, %arg3: memref<32x1xf32, #tpu.memory_space<vmem>>, %arg4: memref<1x32xf32, #tpu.memory_space<vmem>>, %arg5: memref<1x1xf32, #tpu.memory_space<vmem>>, %arg6: memref<1x128xf32, #tpu.memory_space<vmem>>) attributes {dimension_semantics = [#tpu.dimension_semantics<parallel>], iteration_bounds = array<i64: 1>, scalar_prefetch = 0 : i64, scratch_operands = 0 : i64, tpu.core_type = #tpu.core_type<tc>, window_params = [{transform_indices = @transform_0, window_bounds = array<i64: 32, 128>}, {pipeline_mode = #tpu.pipeline_mode<synchronous>, transform_indices = @transform_1, window_bounds = array<i64: 32, 1>}, {pipeline_mode = #tpu.pipeline_mode<synchronous>, transform_indices = @transform_2, window_bounds = array<i64: 32, 1>}, {pipeline_mode = #tpu.pipeline_mode<synchronous>, transform_indices = @transform_3, window_bounds = array<i64: 1, 32>}, {pipeline_mode = #tpu.pipeline_mode<synchronous>, transform_indices = @transform_4, window_bounds = array<i64: 1, 1>}, {transform_indices = @transform_5, window_bounds = array<i64: 1, 128>}]} {
    %c0 = arith.constant 0 : index
    %c0_0 = arith.constant 0 : index
    %0 = vector.load %arg1[%c0, %c0_0] : memref<32x128xf32, #tpu.memory_space<vmem>>, vector<32x128xf32>
    %c0_1 = arith.constant 0 : index
    %c0_2 = arith.constant 0 : index
    %1 = vector.load %arg2[%c0_1, %c0_2] : memref<32x1xf32, #tpu.memory_space<vmem>>, vector<32x1xf32>
    %2 = vector.broadcast %1 : vector<32x1xf32> to vector<32x128xf32>
    %3 = arith.mulf %0, %2 : vector<32x128xf32>
    %c0_3 = arith.constant 0 : index
    %c0_4 = arith.constant 0 : index
    %4 = vector.load %arg3[%c0_3, %c0_4] : memref<32x1xf32, #tpu.memory_space<vmem>>, vector<32x1xf32>
    %5 = vector.broadcast %4 : vector<32x1xf32> to vector<32x128xf32>
    %6 = arith.addf %3, %5 : vector<32x128xf32>
    %cst = arith.constant 0.000000e+00 : f32
    %7 = vector.broadcast %cst : f32 to vector<32x128xf32>
    %8 = arith.maximumf %6, %7 : vector<32x128xf32>
    %c0_5 = arith.constant 0 : index
    %c0_6 = arith.constant 0 : index
    %9 = vector.load %arg4[%c0_5, %c0_6] : memref<1x32xf32, #tpu.memory_space<vmem>>, vector<1x32xf32>
    %cst_7 = arith.constant dense<0.000000e+00> : vector<1x128xf32>
    %10 = tpu.matmul %9, %8, %cst_7 {dimension_numbers = #tpu.dot_dimension_numbers<[1], [0], [0], [1], [0, 0, 1, 1], [], []>} : vector<1x32xf32>, vector<32x128xf32>, vector<1x128xf32> -> vector<1x128xf32>
    %c0_8 = arith.constant 0 : index
    %c0_9 = arith.constant 0 : index
    %11 = vector.load %arg5[%c0_8, %c0_9] : memref<1x1xf32, #tpu.memory_space<vmem>>, vector<1x1xf32>
    %12 = vector.broadcast %11 : vector<1x1xf32> to vector<1x128xf32>
    %13 = arith.addf %10, %12 : vector<1x128xf32>
    %cst_10 = arith.constant 0.000000e+00 : f32
    %14 = vector.broadcast %cst_10 : f32 to vector<1x128xf32>
    %15 = arith.subf %14, %13 : vector<1x128xf32>
    %16 = math.exp %15 : vector<1x128xf32>
    %cst_11 = arith.constant 1.000000e+00 : f32
    %17 = vector.broadcast %cst_11 : f32 to vector<1x128xf32>
    %18 = arith.addf %17, %16 : vector<1x128xf32>
    %cst_12 = arith.constant 1.000000e+00 : f32
    %19 = vector.broadcast %cst_12 : f32 to vector<1x128xf32>
    %20 = arith.divf %19, %18 : vector<1x128xf32>
    %c0_13 = arith.constant 0 : index
    %c0_14 = arith.constant 0 : index
    %21 = vector.load %arg6[%c0_13, %c0_14] : memref<1x128xf32, #tpu.memory_space<vmem>>, vector<1x128xf32>
    tpu.vector_store %arg6[%c0_13, %c0_14], %20 {strides = array<i32>} : memref<1x128xf32, #tpu.memory_space<vmem>>, vector<1x128xf32>,
    return
  }
  func.func @transform_0(%arg0: i32) -> (i32, i32) {
    %c0_i32 = arith.constant 0 : i32
    %c0_i32_0 = arith.constant 0 : i32
    return %c0_i32, %arg0 : i32, i32
  }
  func.func @transform_1(%arg0: i32) -> (i32, i32) {
    %c0_i32 = arith.constant 0 : i32
    %c0_i32_0 = arith.constant 0 : i32
    %c0_i32_1 = arith.constant 0 : i32
    return %c0_i32, %c0_i32_0 : i32, i32
  }
  func.func @transform_2(%arg0: i32) -> (i32, i32) {
    %c0_i32 = arith.constant 0 : i32
    %c0_i32_0 = arith.constant 0 : i32
    %c0_i32_1 = arith.constant 0 : i32
    return %c0_i32, %c0_i32_0 : i32, i32
  }
  func.func @transform_3(%arg0: i32) -> (i32, i32) {
    %c0_i32 = arith.constant 0 : i32
    %c0_i32_0 = arith.constant 0 : i32
    %c0_i32_1 = arith.constant 0 : i32
    return %c0_i32, %c0_i32_0 : i32, i32
  }
  func.func @transform_4(%arg0: i32) -> (i32, i32) {
    %c0_i32 = arith.constant 0 : i32
    %c0_i32_0 = arith.constant 0 : i32
    %c0_i32_1 = arith.constant 0 : i32
    return %c0_i32, %c0_i32_0 : i32, i32
  }
  func.func @transform_5(%arg0: i32) -> (i32, i32) {
    %c0_i32 = arith.constant 0 : i32
    %c0_i32_0 = arith.constant 0 : i32
    return %c0_i32, %arg0 : i32, i32
  }
}

module attributes {stable_mosaic.version = 11 : i64} {
  func.func @_ncf_fc1_kernel(%arg0: i32, %arg1: memref<8x128xf32, #tpu.memory_space<vmem>>, %arg2: memref<8x128xf32, #tpu.memory_space<vmem>>, %arg3: memref<8x128xf32, #tpu.memory_space<vmem>>, %arg4: memref<8x128xf32, #tpu.memory_space<vmem>>, %arg5: memref<32x8xf32, #tpu.memory_space<vmem>>, %arg6: memref<32x8xf32, #tpu.memory_space<vmem>>, %arg7: memref<32x1xf32, #tpu.memory_space<vmem>>, %arg8: memref<16x32xf32, #tpu.memory_space<vmem>>, %arg9: memref<16x1xf32, #tpu.memory_space<vmem>>, %arg10: memref<8x16xf32, #tpu.memory_space<vmem>>, %arg11: memref<8x1xf32, #tpu.memory_space<vmem>>, %arg12: memref<32x8xf32, #tpu.memory_space<vmem>>, %arg13: memref<32x8xf32, #tpu.memory_space<vmem>>, %arg14: memref<32x1xf32, #tpu.memory_space<vmem>>, %arg15: memref<32x128xf32, #tpu.memory_space<vmem>>, %arg16: memref<32x1xf32, #tpu.memory_space<vmem>>, %arg17: memref<32x1xf32, #tpu.memory_space<vmem>>) attributes {dimension_semantics = [#tpu.dimension_semantics<arbitrary>], iteration_bounds = array<i64: 1>, scalar_prefetch = 0 : i64, scratch_operands = 0 : i64, tpu.core_type = #tpu.core_type<tc>, window_params = [{transform_indices = @transform_0, window_bounds = array<i64: 8, 128>}, {transform_indices = @transform_1, window_bounds = array<i64: 8, 128>}, {transform_indices = @transform_2, window_bounds = array<i64: 8, 128>}, {transform_indices = @transform_3, window_bounds = array<i64: 8, 128>}, {pipeline_mode = #tpu.pipeline_mode<synchronous>, transform_indices = @transform_4, window_bounds = array<i64: 32, 8>}, {pipeline_mode = #tpu.pipeline_mode<synchronous>, transform_indices = @transform_5, window_bounds = array<i64: 32, 8>}, {pipeline_mode = #tpu.pipeline_mode<synchronous>, transform_indices = @transform_6, window_bounds = array<i64: 32, 1>}, {pipeline_mode = #tpu.pipeline_mode<synchronous>, transform_indices = @transform_7, window_bounds = array<i64: 16, 32>}, {pipeline_mode = #tpu.pipeline_mode<synchronous>, transform_indices = @transform_8, window_bounds = array<i64: 16, 1>}, {pipeline_mode = #tpu.pipeline_mode<synchronous>, transform_indices = @transform_9, window_bounds = array<i64: 8, 16>}, {pipeline_mode = #tpu.pipeline_mode<synchronous>, transform_indices = @transform_10, window_bounds = array<i64: 8, 1>}, {pipeline_mode = #tpu.pipeline_mode<synchronous>, transform_indices = @transform_11, window_bounds = array<i64: 32, 8>}, {pipeline_mode = #tpu.pipeline_mode<synchronous>, transform_indices = @transform_12, window_bounds = array<i64: 32, 8>}, {pipeline_mode = #tpu.pipeline_mode<synchronous>, transform_indices = @transform_13, window_bounds = array<i64: 32, 1>}, {transform_indices = @transform_14, window_bounds = array<i64: 32, 128>}, {pipeline_mode = #tpu.pipeline_mode<synchronous>, transform_indices = @transform_15, window_bounds = array<i64: 32, 1>}, {pipeline_mode = #tpu.pipeline_mode<synchronous>, transform_indices = @transform_16, window_bounds = array<i64: 32, 1>}]} {
    %c0 = arith.constant 0 : index
    %c0_0 = arith.constant 0 : index
    %0 = vector.load %arg5[%c0, %c0_0] : memref<32x8xf32, #tpu.memory_space<vmem>>, vector<32x8xf32>
    %c0_1 = arith.constant 0 : index
    %c0_2 = arith.constant 0 : index
    %1 = vector.load %arg1[%c0_1, %c0_2] : memref<8x128xf32, #tpu.memory_space<vmem>>, vector<8x128xf32>
    %cst = arith.constant dense<0.000000e+00> : vector<32x128xf32>
    %2 = tpu.matmul %0, %1, %cst {dimension_numbers = #tpu.dot_dimension_numbers<[1], [0], [0], [1], [0, 0, 1, 1], [], []>} : vector<32x8xf32>, vector<8x128xf32>, vector<32x128xf32> -> vector<32x128xf32>
    %c0_3 = arith.constant 0 : index
    %c0_4 = arith.constant 0 : index
    %3 = vector.load %arg6[%c0_3, %c0_4] : memref<32x8xf32, #tpu.memory_space<vmem>>, vector<32x8xf32>
    %c0_5 = arith.constant 0 : index
    %c0_6 = arith.constant 0 : index
    %4 = vector.load %arg2[%c0_5, %c0_6] : memref<8x128xf32, #tpu.memory_space<vmem>>, vector<8x128xf32>
    %cst_7 = arith.constant dense<0.000000e+00> : vector<32x128xf32>
    %5 = tpu.matmul %3, %4, %cst_7 {dimension_numbers = #tpu.dot_dimension_numbers<[1], [0], [0], [1], [0, 0, 1, 1], [], []>} : vector<32x8xf32>, vector<8x128xf32>, vector<32x128xf32> -> vector<32x128xf32>
    %6 = arith.addf %2, %5 : vector<32x128xf32>
    %c0_8 = arith.constant 0 : index
    %c0_9 = arith.constant 0 : index
    %7 = vector.load %arg7[%c0_8, %c0_9] : memref<32x1xf32, #tpu.memory_space<vmem>>, vector<32x1xf32>
    %8 = vector.broadcast %7 : vector<32x1xf32> to vector<32x128xf32>
    %9 = arith.addf %6, %8 : vector<32x128xf32>
    %cst_10 = arith.constant 0.000000e+00 : f32
    %10 = vector.broadcast %cst_10 : f32 to vector<32x128xf32>
    %11 = arith.maximumf %9, %10 : vector<32x128xf32>
    %c0_11 = arith.constant 0 : index
    %c0_12 = arith.constant 0 : index
    %12 = vector.load %arg8[%c0_11, %c0_12] : memref<16x32xf32, #tpu.memory_space<vmem>>, vector<16x32xf32>
    %cst_13 = arith.constant dense<0.000000e+00> : vector<16x128xf32>
    %13 = tpu.matmul %12, %11, %cst_13 {dimension_numbers = #tpu.dot_dimension_numbers<[1], [0], [0], [1], [0, 0, 1, 1], [], []>} : vector<16x32xf32>, vector<32x128xf32>, vector<16x128xf32> -> vector<16x128xf32>
    %c0_14 = arith.constant 0 : index
    %c0_15 = arith.constant 0 : index
    %14 = vector.load %arg9[%c0_14, %c0_15] : memref<16x1xf32, #tpu.memory_space<vmem>>, vector<16x1xf32>
    %15 = vector.broadcast %14 : vector<16x1xf32> to vector<16x128xf32>
    %16 = arith.addf %13, %15 : vector<16x128xf32>
    %cst_16 = arith.constant 0.000000e+00 : f32
    %17 = vector.broadcast %cst_16 : f32 to vector<16x128xf32>
    %18 = arith.maximumf %16, %17 : vector<16x128xf32>
    %c0_17 = arith.constant 0 : index
    %c0_18 = arith.constant 0 : index
    %19 = vector.load %arg10[%c0_17, %c0_18] : memref<8x16xf32, #tpu.memory_space<vmem>>, vector<8x16xf32>
    %cst_19 = arith.constant dense<0.000000e+00> : vector<8x128xf32>
    %20 = tpu.matmul %19, %18, %cst_19 {dimension_numbers = #tpu.dot_dimension_numbers<[1], [0], [0], [1], [0, 0, 1, 1], [], []>} : vector<8x16xf32>, vector<16x128xf32>, vector<8x128xf32> -> vector<8x128xf32>
    %c0_20 = arith.constant 0 : index
    %c0_21 = arith.constant 0 : index
    %21 = vector.load %arg11[%c0_20, %c0_21] : memref<8x1xf32, #tpu.memory_space<vmem>>, vector<8x1xf32>
    %22 = vector.broadcast %21 : vector<8x1xf32> to vector<8x128xf32>
    %23 = arith.addf %20, %22 : vector<8x128xf32>
    %cst_22 = arith.constant 0.000000e+00 : f32
    %24 = vector.broadcast %cst_22 : f32 to vector<8x128xf32>
    %25 = arith.maximumf %23, %24 : vector<8x128xf32>
    %c0_23 = arith.constant 0 : index
    %c0_24 = arith.constant 0 : index
    %26 = vector.load %arg3[%c0_23, %c0_24] : memref<8x128xf32, #tpu.memory_space<vmem>>, vector<8x128xf32>
    %c0_25 = arith.constant 0 : index
    %c0_26 = arith.constant 0 : index
    %27 = vector.load %arg4[%c0_25, %c0_26] : memref<8x128xf32, #tpu.memory_space<vmem>>, vector<8x128xf32>
    %28 = arith.mulf %26, %27 : vector<8x128xf32>
    %c0_27 = arith.constant 0 : index
    %c0_28 = arith.constant 0 : index
    %29 = vector.load %arg12[%c0_27, %c0_28] : memref<32x8xf32, #tpu.memory_space<vmem>>, vector<32x8xf32>
    %cst_29 = arith.constant dense<0.000000e+00> : vector<32x128xf32>
    %30 = tpu.matmul %29, %25, %cst_29 {dimension_numbers = #tpu.dot_dimension_numbers<[1], [0], [0], [1], [0, 0, 1, 1], [], []>} : vector<32x8xf32>, vector<8x128xf32>, vector<32x128xf32> -> vector<32x128xf32>
    %c0_30 = arith.constant 0 : index
    %c0_31 = arith.constant 0 : index
    %31 = vector.load %arg13[%c0_30, %c0_31] : memref<32x8xf32, #tpu.memory_space<vmem>>, vector<32x8xf32>
    %cst_32 = arith.constant dense<0.000000e+00> : vector<32x128xf32>
    %32 = tpu.matmul %31, %28, %cst_32 {dimension_numbers = #tpu.dot_dimension_numbers<[1], [0], [0], [1], [0, 0, 1, 1], [], []>} : vector<32x8xf32>, vector<8x128xf32>, vector<32x128xf32> -> vector<32x128xf32>
    %33 = arith.addf %30, %32 : vector<32x128xf32>
    %c0_33 = arith.constant 0 : index
    %c0_34 = arith.constant 0 : index
    %34 = vector.load %arg14[%c0_33, %c0_34] : memref<32x1xf32, #tpu.memory_space<vmem>>, vector<32x1xf32>
    %35 = vector.broadcast %34 : vector<32x1xf32> to vector<32x128xf32>
    %36 = arith.addf %33, %35 : vector<32x128xf32>
    %c0_35 = arith.constant 0 : index
    %c0_36 = arith.constant 0 : index
    %37 = vector.load %arg15[%c0_35, %c0_36] : memref<32x128xf32, #tpu.memory_space<vmem>>, vector<32x128xf32>
    tpu.vector_store %arg15[%c0_35, %c0_36], %36 {strides = array<i32>} : memref<32x128xf32, #tpu.memory_space<vmem>>, vector<32x128xf32>,
    %c0_i32 = arith.constant 0 : i32
    %38 = arith.cmpi eq, %arg0, %c0_i32 : i32
    %39 = arith.extui %38 : i1 to i32
    %c0_i32_37 = arith.constant 0 : i32
    %40 = arith.cmpi ne, %39, %c0_i32_37 : i32
    scf.if %40 {
      %cst_49 = arith.constant 0.000000e+00 : f32
      %62 = vector.broadcast %cst_49 : f32 to vector<32x1xf32>
      %c0_50 = arith.constant 0 : index
      %c0_51 = arith.constant 0 : index
      %63 = vector.load %arg16[%c0_50, %c0_51] : memref<32x1xf32, #tpu.memory_space<vmem>>, vector<32x1xf32>
      tpu.vector_store %arg16[%c0_50, %c0_51], %62 {strides = array<i32>} : memref<32x1xf32, #tpu.memory_space<vmem>>, vector<32x1xf32>,
      %cst_52 = arith.constant 0.000000e+00 : f32
      %64 = vector.broadcast %cst_52 : f32 to vector<32x1xf32>
      %c0_53 = arith.constant 0 : index
      %c0_54 = arith.constant 0 : index
      %65 = vector.load %arg17[%c0_53, %c0_54] : memref<32x1xf32, #tpu.memory_space<vmem>>, vector<32x1xf32>
      tpu.vector_store %arg17[%c0_53, %c0_54], %64 {strides = array<i32>} : memref<32x1xf32, #tpu.memory_space<vmem>>, vector<32x1xf32>,
    } else {
    }
    %41 = tpu.iota {dimensions = array<i32: 1>} : vector<1x128xi32>
    %c128_i32 = arith.constant 128 : i32
    %42 = arith.muli %arg0, %c128_i32 : i32
    %43 = vector.broadcast %42 : i32 to vector<1x128xi32>
    %44 = arith.addi %41, %43 : vector<1x128xi32>
    %c2_i32 = arith.constant 2 : i32
    %45 = vector.broadcast %c2_i32 : i32 to vector<1x128xi32>
    %46 = arith.cmpi slt, %44, %45 : vector<1x128xi32>
    %cst_38 = arith.constant 0.000000e+00 : f32
    %47 = vector.shape_cast %46 : vector<1x128xi1> to vector<1x128xi1>
    %48 = vector.broadcast %47 : vector<1x128xi1> to vector<32x128xi1>
    %49 = vector.broadcast %cst_38 : f32 to vector<32x128xf32>
    %50 = arith.select %48, %36, %49 : vector<32x128xi1>, vector<32x128xf32>
    %c0_39 = arith.constant 0 : index
    %c0_40 = arith.constant 0 : index
    %51 = vector.load %arg16[%c0_39, %c0_40] : memref<32x1xf32, #tpu.memory_space<vmem>>, vector<32x1xf32>
    %cst_41 = arith.constant dense<0.000000e+00> : vector<32xf32>
    %52 = vector.multi_reduction <add>, %50, %cst_41 [1] : vector<32x128xf32> to vector<32xf32>
    %53 = vector.shape_cast %52 : vector<32xf32> to vector<32x1xf32>
    %54 = arith.addf %51, %53 : vector<32x1xf32>
    %c0_42 = arith.constant 0 : index
    %c0_43 = arith.constant 0 : index
    %55 = vector.load %arg16[%c0_42, %c0_43] : memref<32x1xf32, #tpu.memory_space<vmem>>, vector<32x1xf32>
    tpu.vector_store %arg16[%c0_42, %c0_43], %54 {strides = array<i32>} : memref<32x1xf32, #tpu.memory_space<vmem>>, vector<32x1xf32>,
    %c0_44 = arith.constant 0 : index
    %c0_45 = arith.constant 0 : index
    %56 = vector.load %arg17[%c0_44, %c0_45] : memref<32x1xf32, #tpu.memory_space<vmem>>, vector<32x1xf32>
    %57 = arith.mulf %50, %50 : vector<32x128xf32>
    %cst_46 = arith.constant dense<0.000000e+00> : vector<32xf32>
    %58 = vector.multi_reduction <add>, %57, %cst_46 [1] : vector<32x128xf32> to vector<32xf32>
    %59 = vector.shape_cast %58 : vector<32xf32> to vector<32x1xf32>
    %60 = arith.addf %56, %59 : vector<32x1xf32>
    %c0_47 = arith.constant 0 : index
    %c0_48 = arith.constant 0 : index
    %61 = vector.load %arg17[%c0_47, %c0_48] : memref<32x1xf32, #tpu.memory_space<vmem>>, vector<32x1xf32>
    tpu.vector_store %arg17[%c0_47, %c0_48], %60 {strides = array<i32>} : memref<32x1xf32, #tpu.memory_space<vmem>>, vector<32x1xf32>,
    return
  }
  func.func @transform_0(%arg0: i32) -> (i32, i32) {
    %c0_i32 = arith.constant 0 : i32
    %c0_i32_0 = arith.constant 0 : i32
    return %c0_i32, %arg0 : i32, i32
  }
  func.func @transform_1(%arg0: i32) -> (i32, i32) {
    %c0_i32 = arith.constant 0 : i32
    %c0_i32_0 = arith.constant 0 : i32
    return %c0_i32, %arg0 : i32, i32
  }
  func.func @transform_2(%arg0: i32) -> (i32, i32) {
    %c0_i32 = arith.constant 0 : i32
    %c0_i32_0 = arith.constant 0 : i32
    return %c0_i32, %arg0 : i32, i32
  }
  func.func @transform_3(%arg0: i32) -> (i32, i32) {
    %c0_i32 = arith.constant 0 : i32
    %c0_i32_0 = arith.constant 0 : i32
    return %c0_i32, %arg0 : i32, i32
  }
  func.func @transform_4(%arg0: i32) -> (i32, i32) {
    %c0_i32 = arith.constant 0 : i32
    %c0_i32_0 = arith.constant 0 : i32
    %c0_i32_1 = arith.constant 0 : i32
    return %c0_i32, %c0_i32_0 : i32, i32
  }
  func.func @transform_5(%arg0: i32) -> (i32, i32) {
    %c0_i32 = arith.constant 0 : i32
    %c0_i32_0 = arith.constant 0 : i32
    %c0_i32_1 = arith.constant 0 : i32
    return %c0_i32, %c0_i32_0 : i32, i32
  }
  func.func @transform_6(%arg0: i32) -> (i32, i32) {
    %c0_i32 = arith.constant 0 : i32
    %c0_i32_0 = arith.constant 0 : i32
    %c0_i32_1 = arith.constant 0 : i32
    return %c0_i32, %c0_i32_0 : i32, i32
  }
  func.func @transform_7(%arg0: i32) -> (i32, i32) {
    %c0_i32 = arith.constant 0 : i32
    %c0_i32_0 = arith.constant 0 : i32
    %c0_i32_1 = arith.constant 0 : i32
    return %c0_i32, %c0_i32_0 : i32, i32
  }
  func.func @transform_8(%arg0: i32) -> (i32, i32) {
    %c0_i32 = arith.constant 0 : i32
    %c0_i32_0 = arith.constant 0 : i32
    %c0_i32_1 = arith.constant 0 : i32
    return %c0_i32, %c0_i32_0 : i32, i32
  }
  func.func @transform_9(%arg0: i32) -> (i32, i32) {
    %c0_i32 = arith.constant 0 : i32
    %c0_i32_0 = arith.constant 0 : i32
    %c0_i32_1 = arith.constant 0 : i32
    return %c0_i32, %c0_i32_0 : i32, i32
  }
  func.func @transform_10(%arg0: i32) -> (i32, i32) {
    %c0_i32 = arith.constant 0 : i32
    %c0_i32_0 = arith.constant 0 : i32
    %c0_i32_1 = arith.constant 0 : i32
    return %c0_i32, %c0_i32_0 : i32, i32
  }
  func.func @transform_11(%arg0: i32) -> (i32, i32) {
    %c0_i32 = arith.constant 0 : i32
    %c0_i32_0 = arith.constant 0 : i32
    %c0_i32_1 = arith.constant 0 : i32
    return %c0_i32, %c0_i32_0 : i32, i32
  }
  func.func @transform_12(%arg0: i32) -> (i32, i32) {
    %c0_i32 = arith.constant 0 : i32
    %c0_i32_0 = arith.constant 0 : i32
    %c0_i32_1 = arith.constant 0 : i32
    return %c0_i32, %c0_i32_0 : i32, i32
  }
  func.func @transform_13(%arg0: i32) -> (i32, i32) {
    %c0_i32 = arith.constant 0 : i32
    %c0_i32_0 = arith.constant 0 : i32
    %c0_i32_1 = arith.constant 0 : i32
    return %c0_i32, %c0_i32_0 : i32, i32
  }
  func.func @transform_14(%arg0: i32) -> (i32, i32) {
    %c0_i32 = arith.constant 0 : i32
    %c0_i32_0 = arith.constant 0 : i32
    return %c0_i32, %arg0 : i32, i32
  }
  func.func @transform_15(%arg0: i32) -> (i32, i32) {
    %c0_i32 = arith.constant 0 : i32
    %c0_i32_0 = arith.constant 0 : i32
    %c0_i32_1 = arith.constant 0 : i32
    return %c0_i32, %c0_i32_0 : i32, i32
  }
  func.func @transform_16(%arg0: i32) -> (i32, i32) {
    %c0_i32 = arith.constant 0 : i32
    %c0_i32_0 = arith.constant 0 : i32
    %c0_i32_1 = arith.constant 0 : i32
    return %c0_i32, %c0_i32_0 : i32, i32
  }
}

</mosaic_0001>

<bundles_post_ra>
// kernel: _mlp_forward.3
= control target key start
LH: loop header
LB: loop body
LE: loop exit
PB: predicated region body
PF: predicated region fallthrough
CT: control target
= control target key end

     0   :  { %v208_v0 = vmov 0   ;;  %v209_v6 = vmov 0.0   ;;  %vm210_vm0 = vmmov 0   ;;  %vm97_vm1 = vcmask 261120   ;;  %s286_s2 = inlined_call_operand.vmem [shape: f32[32,1], index: 2, kind: input, shape index: {}]   ;;  %s287_s1 = inlined_call_operand.vmem [shape: f32[32,1], index: 1, kind: input, shape index: {}]   ;;  %s288_s4 = inlined_call_operand.<no memory space> [shape: f32[1,1], index: 4, kind: input, shape index: {}]   ;;  %s289_s0 = inlined_call_operand.vmem [shape: f32[32,128], index: 0, kind: input, shape index: {}]   ;;  %s290_s3 = inlined_call_operand.vmem [shape: f32[1,32], index: 3, kind: input, shape index: {}]   ;;  %s291_s5 = inlined_call_operand.vmem [shape: f32[1,128], index: 5, kind: output, shape index: {}]  }
   0x1   :  { %203 = vset.pattern.permute.xlu1 %v208_v0  ;;  %202 = vset.pattern.permute.xlu0 %v208_v0  ;;  %v57_v1 = vld [vmem:[%s286_s2 + $0x18] sm:$0xff]  ;;  %v10_v3 = vstv %s288_s4  ;;  %v28_v4 = vld [vmem:[%s287_s1 + $0x10] sm:$0xff]  ;;  %v27_v5 = vld [vmem:[%s287_s1 + $0x8] sm:$0xff]  ;;  %v93_v37 = vlaneseq }
   0x2   :  { %v29_v2 = vld [vmem:[%s287_s1 + $0x18] sm:$0xff]  ;;  %75 = vperm.xlu1 %203, %v57_v1   ;;  %11 = vst [vmem:[#allocation2] sm:$0x1] %v10_v3  ;;  %188 = vmatprep.subr.mxu0 %v209_v6  ;;  %v56_v7 = vld [vmem:[%s286_s2 + $0x10] sm:$0xff]  ;;  %v26_v8 = vld [vmem:[%s287_s1] sm:$0xff] }
   0x3   :  { %47 = vperm.xlu0 %202, %v29_v2   ;;  %v55_v9 = vld [vmem:[%s286_s2 + $0x8] sm:$0xff]  ;;  %v54_v10 = vld [vmem:[%s286_s2] sm:$0xff]  ;;  %196 = vmatprep.mubr.msk.f32.mxu0 %vm210_vm0, %v209_v6  ;;  %v25_v12 = vld [vmem:[%s289_s0 + $0x18] sm:$0xff]  ;;  %v94_v38 = vshrl.u32 %v93_v37, 7 }
   0x4   :  { %v24_v18 = vld [vmem:[%s289_s0 + $0x10] sm:$0xff]  ;;  %v23_v22 = vld [vmem:[%s289_s0 + $0x8] sm:$0xff]  ;;  %v22_v25 = vld [vmem:[%s289_s0] sm:$0xff] }
   0x5   :  { %v86_v36 = vld [vmem:[%s290_s3] sm:$0x1]  ;;  %v95_v39 = vsub.s32 0, %v94_v38 }
   0x6   :  { %37 = vperm.xlu1 %203, %v27_v5  }
   0x7   :  { %42 = vperm.xlu0 %202, %v28_v4  }
   0x9   :  { %v87_v11 = vld [vmem:[#allocation2] sm:$0x1] }
   0xa   :  { %32 = vperm.xlu1 %203, %v26_v8  }
   0xb   :  { %70 = vperm.xlu0 %202, %v56_v7  }
   0xe   :  { %60 = vperm.xlu1 %203, %v54_v10  }
   0xf   :  { %65 = vperm.xlu0 %202, %v55_v9  }
  0x13   :  { %90 = vperm.xlu0 %202, %v87_v11  }
  0x7d   :  { %v76_v13 = vpop.permute.xlu1 %75 }
  0x7e   :  { %v48_v14 = vpop.permute.xlu0 %47 }
  0x7f   :  { %v53_v15 = vmul.f32 %v48_v14, %v25_v12 }
  0x81   :  { %v81_v16 = vadd.f32 %v76_v13, %v53_v15  ;;  %v38_v19 = vpop.permute.xlu1 %37 }
  0x82   :  { %v43_v17 = vpop.permute.xlu0 %42  ;;  %v51_v27 = vmul.f32 %v38_v19, %v23_v22 }
  0x83   :  { %v85_v20 = vmax.f32 %v81_v16, 0.0  ;;  %v52_v21 = vmul.f32 %v43_v17, %v24_v18 }
  0x85   :  { %189 = vmatpush3.msra.mxu0 %v85_v20  ;;  %v33_v24 = vpop.permute.xlu1 %32 }
  0x86   :  { %v71_v23 = vpop.permute.xlu0 %70  ;;  %190 = vmatprep.subr.mxu0 %v209_v6  ;;  %v50_v29 = vmul.f32 %v33_v24, %v22_v25 }
  0x87   :  { %v80_v26 = vadd.f32 %v71_v23, %v52_v21 }
  0x89   :  { %v84_v28 = vmax.f32 %v80_v26, 0.0  ;;  %v61_v31 = vpop.permute.xlu1 %60 }
  0x8a   :  { %v66_v30 = vpop.permute.xlu0 %65  ;;  %v78_v33 = vadd.f32 %v61_v31, %v50_v29 }
  0x8b   :  { %v79_v32 = vadd.f32 %v66_v30, %v51_v27  ;;  %191 = vmatpush3.msra.mxu0 %v84_v28 }
  0x8c   :  { %192 = vmatprep.subr.mxu0 %v209_v6  ;;  %v82_v35 = vmax.f32 %v78_v33, 0.0 }
  0x8d   :  { %v83_v34 = vmax.f32 %v79_v32, 0.0 }
  0x8e   :  { %v91_v40 = vpop.permute.xlu0 %90 }
  0x8f   :  { %193 = vmatpush3.msra.mxu0 %v83_v34  ;;  %v96_v41 = vrot.slane %v91_v40, %v95_v39 }
  0x90   :  { %194 = vmatprep.subr.mxu0 %v209_v6 }
  0x91   :  { %195 = vmatpush3.msra.mxu0 %v82_v35 }
  0x92   :  { %197 = vmatmul.mubr.msk.f32.vlgmr.msra.gmra.mxu0 %vm97_vm1, %v86_v36 }
 0x152   :  { %v167_v42 = vpop.f32.mrf.mxu0 }
 0x153   :  { %v168_v43 = vadd.f32 %v167_v42, %v96_v41 }
 0x154   :  { %v198_v44 = vpop.f32.mrf.mxu0 }
 0x155   :  { %v171_v45 = vsub.f32 0.0, %v168_v43 }
 0x157   :  { %v172_v46 = vmul.f32 1.442695, %v171_v45 }
 0x159   :  { %204 = vpow2.f32 %v172_v46 }
 0x166   :  { %v205_v47 = vpop.eup %204 }
 0x167   :  { %v174_v48 = vadd.f32 1.0, %v205_v47 }
 0x169   :  { %206 = vrcp.f32 %v174_v48 }
 0x176   :  { %v207_v49 = vpop.eup %206 }
 0x177   :  { %177 = vst [vmem:[%s291_s5] sm:$0x1] %v207_v49 }

// kernel: _mlp_forward.2
= control target key start
LH: loop header
LB: loop body
LE: loop exit
PB: predicated region body
PF: predicated region fallthrough
CT: control target
= control target key end

     0   :  { %vm60_vm0 = vcmask 64512   ;;  %v889_v3 = vmov 0   ;;  %vm301_vm1 = vcmask 261120   ;;  %v890_v48 = vmov 0.0   ;;  %s1212_s1 = inlined_call_operand.vmem [shape: f32[8,128], index: 1, kind: input, shape index: {}]   ;;  %s1213_s0 = inlined_call_operand.vmem [shape: f32[8,128], index: 0, kind: input, shape index: {}]   ;;  %s1214_s5 = inlined_call_operand.vmem [shape: f32[32,8], index: 5, kind: input, shape index: {}]   ;;  %s1215_s4 = inlined_call_operand.vmem [shape: f32[32,8], index: 4, kind: input, shape index: {}]   ;;  %s1216_s6 = inlined_call_operand.vmem [shape: f32[32,1], index: 6, kind: input, shape index: {}]   ;;  %s1217_s8 = inlined_call_operand.vmem [shape: f32[16,1], index: 8, kind: input, shape index: {}]   ;;  %s1218_s10 = inlined_call_operand.vmem [shape: f32[8,1], index: 10, kind: input, shape index: {}]   ;;  %s1219_s13 = inlined_call_operand.vmem [shape: f32[32,1], index: 13, kind: input, shape index: {}]   ;;  %s1220_s7 = inlined_call_operand.vmem [shape: f32[16,32], index: 7, kind: input, shape index: {}]   ;;  %s1221_s9 = inlined_call_operand.vmem [shape: f32[8,16], index: 9, kind: input, shape index: {}]   ;;  %s1222_s2 = inlined_call_operand.vmem [shape: f32[8,128], index: 2, kind: input, shape index: {}]   ;;  %s1223_s3 = inlined_call_operand.vmem [shape: f32[8,128], index: 3, kind: input, shape index: {}]   ;;  %s1224_s12 = inlined_call_operand.vmem [shape: f32[32,8], index: 12, kind: input, shape index: {}]   ;;  %s1225_s11 = inlined_call_operand.vmem [shape: f32[32,8], index: 11, kind: input, shape index: {}]   ;;  %s1226_s15 = inlined_call_operand.vmem [shape: f32[32,1], index: 15, kind: output, shape index: {1}]   ;;  %s1227_s14 = inlined_call_operand.vmem [shape: f32[32,128], index: 14, kind: output, shape index: {0}]   ;;  %s1228_s16 = inlined_call_operand.vmem [shape: f32[32,1], index: 16, kind: output, shape index: {2}]  }
   0x1   :  { %1229 = sst [smem:[#allocation2_spill]] %s1212_s1  ;;  %v54_v1 = vld [vmem:[%s1213_s0] sm:$0xff]  ;;  %887 = vset.pattern.permute.xlu0 %v889_v3  ;;  %888 = vset.pattern.permute.xlu1 %v889_v3  ;;  %v56_v5 = vld [vmem:[%s1214_s5 + $0x8] sm:$0xff]  ;;  %v57_v7 = vld [vmem:[%s1214_s5 + $0x10] sm:$0xff]  ;;  %vm891_vm2 = vmmov 0   ;;  %vm392_vm3 = vcmask 130048  }
   0x2   :  { %s1230_s23 = sld [smem:[#allocation2_spill]]  ;;  %v55_v2 = vld [vmem:[%s1214_s5] sm:$0xff]  ;;  %842 = vmatprep.subr.mxu1 %v54_v1  ;;  %v51_v6 = vld [vmem:[%s1215_s4 + $0x8] sm:$0xff]  ;;  %v52_v8 = vld [vmem:[%s1215_s4 + $0x10] sm:$0xff]  ;;  %vm708_vm4 = vcmask 7168  }
   0x3   :  { %v50_v4 = vld [vmem:[%s1215_s4] sm:$0xff]  ;;  %836 = vmatprep.mubr.msk.f32.mxu0 %vm60_vm0, %v55_v2  ;;  %843 = vmatpush3.msra.mxu1 %v54_v1  ;;  %v258_v9 = vld [vmem:[%s1216_s6 + $0x18] sm:$0xff]  ;;  %v256_v10 = vld [vmem:[%s1216_s6 + $0x8] sm:$0xff]  ;;  %710 = vst.msk [vmem:[%s1226_s15 + $0x8] sm:$0xff] %vm708_vm4, %v890_v48 }
   0x4   :  { %844 = vmatprep.mubr.msk.f32.mxu1 %vm60_vm0, %v50_v4  ;;  %v58_v11 = vld [vmem:[%s1214_s5 + $0x18] sm:$0xff]  ;;  %276 = vperm.xlu0 %887, %v258_v9   ;;  %v257_v13 = vld [vmem:[%s1216_s6 + $0x10] sm:$0xff]  ;;  %v255_v14 = vld [vmem:[%s1216_s6] sm:$0xff]  ;;  %709 = vst.msk [vmem:[%s1226_s15] sm:$0xff] %vm708_vm4, %v890_v48 }
   0x5   :  { %845 = vmatmul.mubr.msk.f32.vlgmr.msra.gmra.mxu1 %vm60_vm0, %v51_v6  ;;  %v53_v12 = vld [vmem:[%s1215_s4 + $0x18] sm:$0xff]  ;;  %266 = vperm.xlu1 %888, %v256_v10   ;;  %v290_v15 = vld [vmem:[%s1217_s8 + $0x8] sm:$0xff]  ;;  %v289_v16 = vld [vmem:[%s1217_s8] sm:$0xff]  ;;  %711 = vst.msk [vmem:[%s1226_s15 + $0x10] sm:$0xff] %vm708_vm4, %v890_v48 }
   0x6   :  { %847 = vmatprep.mubr.msk.f32.mxu1 %vm60_vm0, %v52_v8  ;;  %v386_v17 = vld [vmem:[%s1218_s10] sm:$0xff]  ;;  %v673_v19 = vld [vmem:[%s1219_s13 + $0x8] sm:$0xff]  ;;  %v674_v20 = vld [vmem:[%s1219_s13 + $0x10] sm:$0xff]  ;;  %861 = vmatprep.subr.mxu1 %v890_v48  ;;  %712 = vst.msk [vmem:[%s1226_s15 + $0x18] sm:$0xff] %vm708_vm4, %v890_v48 }
   0x7   :  { %v672_v18 = vld [vmem:[%s1219_s13] sm:$0xff]  ;;  %v675_v21 = vld [vmem:[%s1219_s13 + $0x18] sm:$0xff]  ;;  %v288_v47 = vld [vmem:[%s1220_s7 + $0x8] sm:$0xff]  ;;  %713 = vst.msk [vmem:[%s1228_s16] sm:$0xff] %vm708_vm4, %v890_v48 }
   0x8   :  { %v59_v0 = vld [vmem:[%s1230_s23] sm:$0xff]  ;;  %271 = vperm.xlu0 %887, %v257_v13   ;;  %v475_v62 = vld [vmem:[%s1224_s12 + $0x8] sm:$0xff]  ;;  %v477_v1 = vld [vmem:[%s1224_s12 + $0x18] sm:$0xff]  ;;  %714 = vst.msk [vmem:[%s1228_s16 + $0x8] sm:$0xff] %vm708_vm4, %v890_v48 }
   0x9   :  { %834 = vmatprep.subr.mxu0 %v59_v0  ;;  %848 = vmatmul.mubr.msk.f32.gmra.mxu1 %vm60_vm0, %v53_v12  ;;  %v287_v22 = vld [vmem:[%s1220_s7] sm:$0xff]  ;;  %v472_v8 = vld [vmem:[%s1225_s11 + $0x10] sm:$0xff]  ;;  %v473_v9 = vld [vmem:[%s1225_s11 + $0x18] sm:$0xff]  ;;  %715 = vst.msk [vmem:[%s1228_s16 + $0x10] sm:$0xff] %vm708_vm4, %v890_v48 }
   0xa   :  { %835 = vmatpush3.msra.mxu0 %v59_v0  ;;  %261 = vperm.xlu1 %888, %v255_v14   ;;  %v385_v57 = vld [vmem:[%s1221_s9] sm:$0xff]  ;;  %v476_v0 = vld [vmem:[%s1224_s12 + $0x10] sm:$0xff]  ;;  %716 = vst.msk [vmem:[%s1228_s16 + $0x18] sm:$0xff] %vm708_vm4, %v890_v48 }
   0xb   :  { %837 = vmatmul.mubr.msk.f32.vlgmr.msra.gmra.mxu0 %vm60_vm0, %v56_v5  ;;  %865 = vmatprep.mubr.msk.f32.mxu1 %vm891_vm2, %v890_v48  ;;  %v467_v58 = vld [vmem:[%s1222_s2] sm:$0xff] }
   0xc   :  { %839 = vmatprep.mubr.msk.f32.mxu0 %vm60_vm0, %v57_v7  ;;  %298 = vperm.xlu0 %887, %v290_v15   ;;  %v468_v59 = vld [vmem:[%s1223_s3] sm:$0xff]  ;;  %v471_v7 = vld [vmem:[%s1225_s11 + $0x8] sm:$0xff] }
   0xd   :  { %v469_v60 = vmul.f32 %v468_v59, %v467_v58  ;;  %v474_v61 = vld [vmem:[%s1224_s12] sm:$0xff] }
   0xe   :  { %293 = vperm.xlu1 %888, %v289_v16   ;;  %v470_v63 = vld [vmem:[%s1225_s11] sm:$0xff] }
   0xf   :  { %840 = vmatmul.mubr.msk.f32.gmra.mxu0 %vm60_vm0, %v58_v11  ;;  %v717_v11 = vlaneseq }
  0x10   :  { %389 = vperm.xlu0 %887, %v386_v17   ;;  %858 = vmatprep.mubr.msk.f32.mxu0 %vm301_vm1, %v287_v22 }
  0x11   :  { %v718_v13 = vand.u32 127, %v717_v11 }
  0x12   :  { %678 = vperm.xlu1 %888, %v672_v18  }
  0x13   :  { %vm722_vm5 = vcmp.lt.s32.totalorder %v718_v13, 2 }
  0x14   :  { %683 = vperm.xlu0 %887, %v673_v19  }
  0x16   :  { %688 = vperm.xlu1 %888, %v674_v20  }
  0x18   :  { %693 = vperm.xlu0 %887, %v675_v21  }
  0x7f   :  { %v277_v25 = vpop.permute.xlu0 %276 }
  0x80   :  { %v267_v28 = vpop.permute.xlu1 %266 }
  0x83   :  { %v272_v38 = vpop.permute.xlu0 %271 }
  0x85   :  { %v262_v42 = vpop.permute.xlu1 %261 }
  0x87   :  { %v299_v49 = vpop.permute.xlu0 %298 }
  0x89   :  { %v294_v52 = vpop.permute.xlu1 %293 }
  0x8b   :  { %v390_v2 = vpop.permute.xlu0 %389 }
  0x8d   :  { %v679_v18 = vpop.permute.xlu1 %678 }
  0x8f   :  { %v684_v14 = vpop.permute.xlu0 %683 }
  0xc5   :  { %v846_v24 = vpop.f32.mrf.mxu1 }
  0xc7   :  { %v236_v27 = vpop.f32.mrf.mxu1 }
  0xc9   :  { %v849_v30 = vpop.f32.mrf.mxu1 }
  0xcb   :  { %v838_v23 = vpop.f32.mrf.mxu0  ;;  %v246_v34 = vpop.f32.mrf.mxu1 }
  0xcc   :  { %v242_v31 = vadd.f32 %v846_v24, %v838_v23 }
  0xcd   :  { %v139_v26 = vpop.f32.mrf.mxu0 }
  0xce   :  { %v237_v35 = vadd.f32 %v236_v27, %v139_v26  ;;  %v280_v39 = vadd.f32 %v267_v28, %v242_v31  ;;  %v694_v27 = vpop.permute.xlu0 %693 }
  0xcf   :  { %v841_v29 = vpop.f32.mrf.mxu0 }
  0xd0   :  { %v252_v32 = vadd.f32 %v849_v30, %v841_v29  ;;  %v279_v43 = vadd.f32 %v262_v42, %v237_v35  ;;  %v284_v45 = vmax.f32 %v280_v39, 0.0  ;;  %v729_v42 = vld [vmem:[%s1226_s15] sm:$0xff] }
  0xd1   :  { %v149_v33 = vpop.f32.mrf.mxu0 }
  0xd2   :  { %v282_v36 = vadd.f32 %v277_v25, %v252_v32  ;;  %v247_v37 = vadd.f32 %v246_v34, %v149_v33  ;;  %v283_v46 = vmax.f32 %v279_v43, 0.0  ;;  %v689_v32 = vpop.permute.xlu1 %688 }
  0xd4   :  { %v286_v40 = vmax.f32 %v282_v36, 0.0  ;;  %v281_v41 = vadd.f32 %v272_v38, %v247_v37 }
  0xd6   :  { %v285_v44 = vmax.f32 %v281_v41, 0.0  ;;  %850 = vmatprep.subr.mxu0 %v286_v40 }
  0xd7   :  { %851 = vmatpush3.msra.mxu0 %v286_v40  ;;  %v730_v40 = vld [vmem:[%s1226_s15 + $0x8] sm:$0xff] }
  0xd8   :  { %852 = vmatprep.subr.mxu0 %v285_v44 }
  0xd9   :  { %853 = vmatpush3.msra.mxu0 %v285_v44 }
  0xda   :  { %854 = vmatprep.subr.mxu0 %v284_v45 }
  0xdb   :  { %855 = vmatpush3.msra.mxu0 %v284_v45  ;;  %v750_v45 = vld [vmem:[%s1228_s16] sm:$0xff] }
  0xdc   :  { %856 = vmatprep.subr.mxu0 %v283_v46 }
  0xdd   :  { %857 = vmatpush3.msra.mxu0 %v283_v46 }
  0xde   :  { %859 = vmatmul.mubr.msk.f32.vlgmr.msra.gmra.mxu0 %vm301_vm1, %v288_v47  ;;  %868 = vmatprep.subr.mxu0 %v469_v60 }
  0xdf   :  { %869 = vmatpush3.msra.mxu0 %v469_v60  ;;  %870 = vmatprep.mubr.msk.f32.mxu0 %vm60_vm0, %v474_v61  ;;  %v753_v60 = vld [vmem:[%s1228_s16 + $0x18] sm:$0xff] }
  0xe2   :  { %871 = vmatmul.mubr.msk.f32.vlgmr.msra.gmra.mxu0 %vm60_vm0, %v475_v62 }
  0xe3   :  { %873 = vmatprep.mubr.msk.f32.mxu0 %vm60_vm0, %v476_v0 }
  0xe6   :  { %874 = vmatmul.mubr.msk.f32.gmra.mxu0 %vm60_vm0, %v477_v1 }
 0x19e   :  { %v860_v50 = vpop.f32.mrf.mxu0 }
 0x19f   :  { %v380_v51 = vadd.f32 %v860_v50, %v299_v49 }
 0x1a0   :  { %v374_v53 = vpop.f32.mrf.mxu0 }
 0x1a1   :  { %v384_v54 = vmax.f32 %v380_v51, 0.0  ;;  %v375_v55 = vadd.f32 %v374_v53, %v294_v52  ;;  %v731_v51 = vld [vmem:[%s1226_s15 + $0x10] sm:$0xff] }
 0x1a2   :  { %v872_v10 = vpop.f32.mrf.mxu0 }
 0x1a3   :  { %v383_v56 = vmax.f32 %v375_v55, 0.0  ;;  %862 = vmatpush3.msra.mxu1 %v384_v54  ;;  %v732_v54 = vld [vmem:[%s1226_s15 + $0x18] sm:$0xff] }
 0x1a4   :  { %863 = vmatprep.subr.mxu1 %v890_v48  ;;  %v556_v12 = vpop.f32.mrf.mxu0  ;;  %v751_v48 = vld [vmem:[%s1228_s16 + $0x8] sm:$0xff] }
 0x1a5   :  { %864 = vmatpush3.msra.mxu1 %v383_v56 }
 0x1a6   :  { %866 = vmatmul.mubr.msk.f32.vlgmr.msra.gmra.mxu1 %vm392_vm3, %v385_v57  ;;  %v875_v16 = vpop.f32.mrf.mxu0  ;;  %v752_v57 = vld [vmem:[%s1228_s16 + $0x10] sm:$0xff] }
 0x1a7   :  { %878 = vmatprep.mubr.msk.f32.mxu1 %vm60_vm0, %v470_v63 }
 0x1a8   :  { %v566_v23 = vpop.f32.mrf.mxu0 }
 0x266   :  { %v462_v3 = vpop.f32.mrf.mxu1 }
 0x267   :  { %v463_v4 = vadd.f32 %v462_v3, %v390_v2 }
 0x268   :  { %v867_v5 = vpop.f32.mrf.mxu1 }
 0x269   :  { %v466_v6 = vmax.f32 %v463_v4, 0.0 }
 0x26b   :  { %876 = vmatprep.subr.mxu1 %v466_v6 }
 0x26c   :  { %877 = vmatpush3.msra.mxu1 %v466_v6 }
 0x26d   :  { %879 = vmatmul.mubr.msk.f32.vlgmr.msra.gmra.mxu1 %vm60_vm0, %v471_v7 }
 0x26e   :  { %881 = vmatprep.mubr.msk.f32.mxu1 %vm60_vm0, %v472_v8 }
 0x271   :  { %882 = vmatmul.mubr.msk.f32.gmra.mxu1 %vm60_vm0, %v473_v9 }
 0x32d   :  { %v880_v15 = vpop.f32.mrf.mxu1 }
 0x32e   :  { %v659_v17 = vadd.f32 %v880_v15, %v872_v10 }
 0x32f   :  { %v653_v19 = vpop.f32.mrf.mxu1 }
 0x330   :  { %v654_v20 = vadd.f32 %v653_v19, %v556_v12  ;;  %v697_v21 = vadd.f32 %v684_v14, %v659_v17 }
 0x331   :  { %v883_v22 = vpop.f32.mrf.mxu1 }
 0x332   :  { %v669_v24 = vadd.f32 %v883_v22, %v875_v16  ;;  %v726_v25 = vsel %vm722_vm5, %v697_v21, 0.0  ;;  %701 = vst [vmem:[%s1227_s14 + $0x8] sm:$0xff] %v697_v21  ;;  %v696_v26 = vadd.f32 %v679_v18, %v654_v20 }
 0x333   :  { %735 = vadd.xlane.f32.xlu0 %v726_v25  ;;  %v663_v28 = vpop.f32.mrf.mxu1  ;;  %v755_v35 = vmul.f32 %v726_v25, %v726_v25 }
 0x334   :  { %v664_v29 = vadd.f32 %v663_v28, %v566_v23  ;;  %v725_v30 = vsel %vm722_vm5, %v696_v26, 0.0  ;;  %700 = vst [vmem:[%s1227_s14] sm:$0xff] %v696_v26  ;;  %v699_v31 = vadd.f32 %v694_v27, %v669_v24 }
 0x335   :  { %733 = vadd.xlane.f32.xlu1 %v725_v30  ;;  %v754_v33 = vmul.f32 %v725_v30, %v725_v30 }
 0x336   :  { %v698_v34 = vadd.f32 %v689_v32, %v664_v29  ;;  %703 = vst [vmem:[%s1227_s14 + $0x18] sm:$0xff] %v699_v31  ;;  %v728_v37 = vsel %vm722_vm5, %v699_v31, 0.0 }
 0x337   :  { %758 = vadd.xlane.f32.xlu0 %v754_v33  ;;  %v757_v39 = vmul.f32 %v728_v37, %v728_v37 }
 0x338   :  { %702 = vst [vmem:[%s1227_s14 + $0x10] sm:$0xff] %v698_v34  ;;  %v727_v36 = vsel %vm722_vm5, %v698_v34, 0.0 }
 0x339   :  { %760 = vadd.xlane.f32.xlu1 %v755_v35  ;;  %v756_v38 = vmul.f32 %v727_v36, %v727_v36 }
 0x33b   :  { %737 = vadd.xlane.f32.xlu0 %v727_v36 }
 0x33d   :  { %739 = vadd.xlane.f32.xlu1 %v728_v37 }
 0x33f   :  { %762 = vadd.xlane.f32.xlu0 %v756_v38 }
 0x341   :  { %764 = vadd.xlane.f32.xlu1 %v757_v39 }
 0x3bc   :  { %v736_v41 = vpop.xlane.xlu0 %735 }
 0x3bd   :  { %v742_v43 = vadd.f32 %v736_v41, %v730_v40 }
 0x3be   :  { %v734_v44 = vpop.xlane.xlu1 %733 }
 0x3bf   :  { %747 = vst.msk [vmem:[%s1226_s15 + $0x8] sm:$0xff] %vm708_vm4, %v742_v43  ;;  %v741_v46 = vadd.f32 %v734_v44, %v729_v42 }
 0x3c0   :  { %v759_v47 = vpop.xlane.xlu0 %758 }
 0x3c1   :  { %746 = vst.msk [vmem:[%s1226_s15] sm:$0xff] %vm708_vm4, %v741_v46  ;;  %v766_v49 = vadd.f32 %v759_v47, %v750_v45 }
 0x3c2   :  { %v761_v50 = vpop.xlane.xlu1 %760 }
 0x3c3   :  { %770 = vst.msk [vmem:[%s1228_s16] sm:$0xff] %vm708_vm4, %v766_v49  ;;  %v767_v52 = vadd.f32 %v761_v50, %v751_v48 }
 0x3c4   :  { %v738_v53 = vpop.xlane.xlu0 %737 }
 0x3c5   :  { %771 = vst.msk [vmem:[%s1228_s16 + $0x8] sm:$0xff] %vm708_vm4, %v767_v52  ;;  %v743_v55 = vadd.f32 %v738_v53, %v731_v51 }
 0x3c6   :  { %v740_v56 = vpop.xlane.xlu1 %739 }
 0x3c7   :  { %748 = vst.msk [vmem:[%s1226_s15 + $0x10] sm:$0xff] %vm708_vm4, %v743_v55  ;;  %v744_v58 = vadd.f32 %v740_v56, %v732_v54 }
 0x3c8   :  { %v763_v59 = vpop.xlane.xlu0 %762 }
 0x3c9   :  { %749 = vst.msk [vmem:[%s1226_s15 + $0x18] sm:$0xff] %vm708_vm4, %v744_v58  ;;  %v768_v61 = vadd.f32 %v763_v59, %v752_v57 }
 0x3ca   :  { %v765_v62 = vpop.xlane.xlu1 %764 }
 0x3cb   :  { %772 = vst.msk [vmem:[%s1228_s16 + $0x10] sm:$0xff] %vm708_vm4, %v768_v61  ;;  %v769_v63 = vadd.f32 %v765_v62, %v753_v60 }
 0x3cd   :  { %773 = vst.msk [vmem:[%s1228_s16 + $0x18] sm:$0xff] %vm708_vm4, %v769_v63 }

</bundles_post_ra>
